<compile_context>
chip_gen: v7x
topology: tpu7x:2x2x1
jax: 0.10.0
libtpu: 0.0.40
codegen_flags: <defaults>
</compile_context>

<pallas_src>
import functools

import jax
import jax.numpy as jnp
from jax import lax
from jax.experimental import pallas as pl
from jax.experimental.pallas import tpu as pltpu

BN_EPS = 1e-5
LANE = 128        # TPU lane width; batch tiles are multiples of this.
OUT_ROWS = 8      # output sublane padding (row 0 is the real scalar output)
TM_MAX = 2048     # batch-tile cap (fits comfortably in every chip's VMEM)


# --------------------------------------------------------------------------
# Kernel: transposed formulation.  Blocks: xT (D_in, TM), out (8, TM).
# Three fused (matmul + bias [+ ReLU]) stages; BN already folded in.
# --------------------------------------------------------------------------
def bugnet_kernel(xt_ref, w1_ref, b1_ref, w2_ref, b2_ref, w3_ref, b3_ref, o_ref):
    xt = xt_ref[...]                                                # (D_in, TM)

    # fc1 (+ folded BN1) + ReLU     -- Dropout(p=0.4) is identity in eval.
    h = jnp.dot(w1_ref[...], xt, preferred_element_type=jnp.float32) + b1_ref[...]
    h = jnp.maximum(h, 0.0)                                         # (H, TM)

    # fc2 (+ folded BN2) + ReLU     -- Dropout(p=0.3) is identity in eval.
    h = jnp.dot(w2_ref[...], h, preferred_element_type=jnp.float32) + b2_ref[...]
    h = jnp.maximum(h, 0.0)                                         # (H2, TM)

    # out linear, padded to 8 output rows (row 0 real) -> lane-dense store.
    o_ref[...] = (
        jnp.dot(w3_ref[...], h, preferred_element_type=jnp.float32) + b3_ref[...]
    )                                                               # (8, TM)


# --------------------------------------------------------------------------
# One-time parameter folding: BN(eval) into the adjacent Linear.
# Weights stay in PyTorch (out, in) layout for the transposed kernel.
# --------------------------------------------------------------------------
def fold_params(p):
    s1 = p["g1"] * lax.rsqrt(p["v1"] + BN_EPS)                      # (H,)
    w1f = p["w1"] * s1[:, None]                                     # (H, D_in)
    b1f = ((p["b1"] - p["m1"]) * s1 + p["beta1"])[:, None]          # (H, 1)

    s2 = p["g2"] * lax.rsqrt(p["v2"] + BN_EPS)                      # (H2,)
    w2f = p["w2"] * s2[:, None]                                     # (H2, H)
    b2f = ((p["b2"] - p["m2"]) * s2 + p["beta2"])[:, None]          # (H2, 1)

    # Output layer padded with zero rows to OUT_ROWS sublanes; row 0 is real,
    # padded rows produce zeros that are simply never read back.
    w3f = jnp.pad(p["w3"], ((0, OUT_ROWS - 1), (0, 0)))             # (8, H2)
    b3f = jnp.pad(p["b3"][:, None], ((0, OUT_ROWS - 1), (0, 0)))    # (8, 1)

    return dict(w1=w1f, b1=b1f, w2=w2f, b2=b2f, w3=w3f, b3=b3f)


def _choose_tm(batch):
    """Lane-aligned batch tile, biased large (per-step overhead ~0.35 us).

    For batches big enough, split into >= 2 tiles so dimension_semantics
    ("parallel",) actually shards across both v7x TensorCores.
    """
    b128 = pl.cdiv(batch, LANE) * LANE
    if b128 <= 2 * LANE:
        return b128                                  # tiny batch: one tile
    if b128 <= 2 * TM_MAX:
        return pl.cdiv(pl.cdiv(b128, 2), LANE) * LANE  # exactly 2 tiles
    return TM_MAX


# --------------------------------------------------------------------------
# Wrapper: batch-on-lanes tiling, weights resident, (8, TM) output slab.
# --------------------------------------------------------------------------
@functools.partial(jax.jit)
def bugnet_forward(x, folded):
    """x: (B, D_in) float32. Returns (B,) float32 (matches .squeeze(1))."""
    B, D_in = x.shape
    w1, b1 = folded["w1"], folded["b1"]
    w2, b2 = folded["w2"], folded["b2"]
    w3, b3 = folded["w3"], folded["b3"]
    H = w1.shape[0]
    H2 = w2.shape[0]

    TM = _choose_tm(B)
    n_tiles = pl.cdiv(B, TM)
    B_pad = n_tiles * TM

    # Layout plumbing only: present x with batch on the lane axis.
    xt = x.T                                                        # (D_in, B)
    if B_pad != B:
        xt = jnp.pad(xt, ((0, 0), (0, B_pad - B)))

    # Resident specs: constant index_map -> DMA'd once, VMEM-resident across
    # all batch tiles.  (pl.Buffered(1) would halve their ~42 KB footprint;
    # omitted as the footprint is already negligible.)
    def resident(shape):
        return pl.BlockSpec(shape, lambda i: (0, 0))

    # Real (unpadded) work for the scheduler hint.
    flops = 2 * B * (D_in * H + H * H2 + H2 * 1)
    bytes_accessed = 4 * (
        B * D_in + B + w1.size + H + w2.size + H2 + H2 + 1
    )

    # Explicit VMEM budget: double-buffered x/out tiles + intermediates +
    # (double-buffered) resident weights, with 2x headroom.
    vmem_bytes = 4 * (
        2 * D_in * TM + 2 * OUT_ROWS * TM + (H + H2) * TM
        + 2 * (w1.size + b1.size + w2.size + b2.size + w3.size + b3.size)
    )
    vmem_limit = int(min(48 << 20, max(16 << 20, 2 * vmem_bytes)))

    out = pl.pallas_call(
        bugnet_kernel,
        out_shape=jax.ShapeDtypeStruct((OUT_ROWS, B_pad), jnp.float32),
        grid_spec=pltpu.PrefetchScalarGridSpec(
            num_scalar_prefetch=0,
            grid=(n_tiles,),
            in_specs=[
                pl.BlockSpec((D_in, TM), lambda i: (0, i)),   # xT: batch-tiled
                resident(w1.shape), resident(b1.shape),
                resident(w2.shape), resident(b2.shape),
                resident(w3.shape), resident(b3.shape),
            ],
            out_specs=pl.BlockSpec((OUT_ROWS, TM), lambda i: (0, i)),
        ),
        compiler_params=pltpu.CompilerParams(
            dimension_semantics=("parallel",),
            vmem_limit_bytes=vmem_limit,
        ),
        cost_estimate=pl.CostEstimate(
            flops=flops, transcendentals=0, bytes_accessed=bytes_accessed
        ),
    )(xt, w1, b1, w2, b2, w3, b3)

    return out[0, :B]  # real output row, real batch columns; == .squeeze(1)


# --------------------------------------------------------------------------
# Synthetic parameters matching BugNet's shapes + pure-JAX reference.
# --------------------------------------------------------------------------
def init_params(key, input_dim, hidden_dim=128):
    h2 = hidden_dim // 2
    ks = jax.random.split(key, 7)

    def lin(kw, kb, fan_in, fan_out):
        # PyTorch Linear layout: (out, in).
        w = jax.random.normal(kw, (fan_out, fan_in), jnp.float32) * 0.1
        b = jax.random.normal(kb, (fan_out,), jnp.float32) * 0.1
        return w, b

    w1, b1 = lin(ks[0], ks[1], input_dim, hidden_dim)
    w2, b2 = lin(ks[2], ks[3], hidden_dim, h2)
    w3, b3 = lin(ks[4], ks[5], h2, 1)

    def bn(k, n):
        kg, kb, km, kv = jax.random.split(k, 4)
        g = 1.0 + 0.1 * jax.random.normal(kg, (n,), jnp.float32)
        beta = 0.1 * jax.random.normal(kb, (n,), jnp.float32)
        m = 0.1 * jax.random.normal(km, (n,), jnp.float32)
        v = jnp.abs(1.0 + 0.1 * jax.random.normal(kv, (n,), jnp.float32))
        return g, beta, m, v

    k1, k2 = jax.random.split(ks[6])
    g1, beta1, m1, v1 = bn(k1, hidden_dim)
    g2, beta2, m2, v2 = bn(k2, h2)

    return dict(
        w1=w1, b1=b1, g1=g1, beta1=beta1, m1=m1, v1=v1,
        w2=w2, b2=b2, g2=g2, beta2=beta2, m2=m2, v2=v2,
        w3=w3, b3=b3,
    )


def reference_forward(x, p):
    """Pure-JAX reference of eval-mode BugNet for sanity checking."""
    h = x @ p["w1"].T + p["b1"]
    h = (h - p["m1"]) * p["g1"] * lax.rsqrt(p["v1"] + BN_EPS) + p["beta1"]
    h = jnp.maximum(h, 0.0)
    h = h @ p["w2"].T + p["b2"]
    h = (h - p["m2"]) * p["g2"] * lax.rsqrt(p["v2"] + BN_EPS) + p["beta2"]
    h = jnp.maximum(h, 0.0)
    return (h @ p["w3"].T + p["b3"])[:, 0]


if __name__ == "__main__":
    key = jax.random.PRNGKey(0)
    k_x, k_p = jax.random.split(key)

    batch, input_dim, hidden_dim = 8, 16, 128   # module default hidden_dim=128
    x = jax.random.normal(k_x, (batch, input_dim), jnp.float32)
    params = init_params(k_p, input_dim, hidden_dim)
    folded = jax.tree_util.tree_map(
        jax.block_until_ready, fold_params(params)
    )  # one-time constant transform, done outside the kernel call

    out = jax.block_until_ready(bugnet_forward(x, folded))

    ref = reference_forward(x, params)
    assert out.shape == (batch,), out.shape
    assert jnp.allclose(out, ref, atol=1e-4, rtol=1e-4), (out, ref)

    print("KERNEL_OK")
</pallas_src>

<mosaic_0001>
module attributes {stable_mosaic.version = 11 : i64} {
  func.func @bugnet_kernel(%arg0: i32, %arg1: memref<16x128xf32, #tpu.memory_space<vmem>>, %arg2: memref<128x16xf32, #tpu.memory_space<vmem>>, %arg3: memref<128x1xf32, #tpu.memory_space<vmem>>, %arg4: memref<64x128xf32, #tpu.memory_space<vmem>>, %arg5: memref<64x1xf32, #tpu.memory_space<vmem>>, %arg6: memref<8x64xf32, #tpu.memory_space<vmem>>, %arg7: memref<8x1xf32, #tpu.memory_space<vmem>>, %arg8: memref<8x128xf32, #tpu.memory_space<vmem>>) attributes {dimension_semantics = [#tpu.dimension_semantics<parallel>], iteration_bounds = array<i64: 1>, scalar_prefetch = 0 : i64, scratch_operands = 0 : i64, tpu.core_type = #tpu.core_type<tc>, window_params = [{transform_indices = @transform_0, window_bounds = array<i64: 16, 128>}, {pipeline_mode = #tpu.pipeline_mode<synchronous>, transform_indices = @transform_1, window_bounds = array<i64: 128, 16>}, {pipeline_mode = #tpu.pipeline_mode<synchronous>, transform_indices = @transform_2, window_bounds = array<i64: 128, 1>}, {pipeline_mode = #tpu.pipeline_mode<synchronous>, transform_indices = @transform_3, window_bounds = array<i64: 64, 128>}, {pipeline_mode = #tpu.pipeline_mode<synchronous>, transform_indices = @transform_4, window_bounds = array<i64: 64, 1>}, {pipeline_mode = #tpu.pipeline_mode<synchronous>, transform_indices = @transform_5, window_bounds = array<i64: 8, 64>}, {pipeline_mode = #tpu.pipeline_mode<synchronous>, transform_indices = @transform_6, window_bounds = array<i64: 8, 1>}, {transform_indices = @transform_7, window_bounds = array<i64: 8, 128>}]} {
    %c0 = arith.constant 0 : index
    %c0_0 = arith.constant 0 : index
    %0 = vector.load %arg1[%c0, %c0_0] : memref<16x128xf32, #tpu.memory_space<vmem>>, vector<16x128xf32>
    %c0_1 = arith.constant 0 : index
    %c0_2 = arith.constant 0 : index
    %1 = vector.load %arg2[%c0_1, %c0_2] : memref<128x16xf32, #tpu.memory_space<vmem>>, vector<128x16xf32>
    %cst = arith.constant dense<0.000000e+00> : vector<128x128xf32>
    %2 = tpu.matmul %1, %0, %cst {dimension_numbers = #tpu.dot_dimension_numbers<[1], [0], [0], [1], [0, 0, 1, 1], [], []>} : vector<128x16xf32>, vector<16x128xf32>, vector<128x128xf32> -> vector<128x128xf32>
    %c0_3 = arith.constant 0 : index
    %c0_4 = arith.constant 0 : index
    %3 = vector.load %arg3[%c0_3, %c0_4] : memref<128x1xf32, #tpu.memory_space<vmem>>, vector<128x1xf32>
    %4 = vector.broadcast %3 : vector<128x1xf32> to vector<128x128xf32>
    %5 = arith.addf %2, %4 : vector<128x128xf32>
    %cst_5 = arith.constant 0.000000e+00 : f32
    %6 = vector.broadcast %cst_5 : f32 to vector<128x128xf32>
    %7 = arith.maximumf %5, %6 : vector<128x128xf32>
    %c0_6 = arith.constant 0 : index
    %c0_7 = arith.constant 0 : index
    %8 = vector.load %arg4[%c0_6, %c0_7] : memref<64x128xf32, #tpu.memory_space<vmem>>, vector<64x128xf32>
    %cst_8 = arith.constant dense<0.000000e+00> : vector<64x128xf32>
    %9 = tpu.matmul %8, %7, %cst_8 {dimension_numbers = #tpu.dot_dimension_numbers<[1], [0], [0], [1], [0, 0, 1, 1], [], []>} : vector<64x128xf32>, vector<128x128xf32>, vector<64x128xf32> -> vector<64x128xf32>
    %c0_9 = arith.constant 0 : index
    %c0_10 = arith.constant 0 : index
    %10 = vector.load %arg5[%c0_9, %c0_10] : memref<64x1xf32, #tpu.memory_space<vmem>>, vector<64x1xf32>
    %11 = vector.broadcast %10 : vector<64x1xf32> to vector<64x128xf32>
    %12 = arith.addf %9, %11 : vector<64x128xf32>
    %cst_11 = arith.constant 0.000000e+00 : f32
    %13 = vector.broadcast %cst_11 : f32 to vector<64x128xf32>
    %14 = arith.maximumf %12, %13 : vector<64x128xf32>
    %c0_12 = arith.constant 0 : index
    %c0_13 = arith.constant 0 : index
    %15 = vector.load %arg6[%c0_12, %c0_13] : memref<8x64xf32, #tpu.memory_space<vmem>>, vector<8x64xf32>
    %cst_14 = arith.constant dense<0.000000e+00> : vector<8x128xf32>
    %16 = tpu.matmul %15, %14, %cst_14 {dimension_numbers = #tpu.dot_dimension_numbers<[1], [0], [0], [1], [0, 0, 1, 1], [], []>} : vector<8x64xf32>, vector<64x128xf32>, vector<8x128xf32> -> vector<8x128xf32>
    %c0_15 = arith.constant 0 : index
    %c0_16 = arith.constant 0 : index
    %17 = vector.load %arg7[%c0_15, %c0_16] : memref<8x1xf32, #tpu.memory_space<vmem>>, vector<8x1xf32>
    %18 = vector.broadcast %17 : vector<8x1xf32> to vector<8x128xf32>
    %19 = arith.addf %16, %18 : vector<8x128xf32>
    %c0_17 = arith.constant 0 : index
    %c0_18 = arith.constant 0 : index
    %20 = vector.load %arg8[%c0_17, %c0_18] : memref<8x128xf32, #tpu.memory_space<vmem>>, vector<8x128xf32>
    tpu.vector_store %arg8[%c0_17, %c0_18], %19 {strides = array<i32>} : memref<8x128xf32, #tpu.memory_space<vmem>>, vector<8x128xf32>,
    return
  }
  func.func @transform_0(%arg0: i32) -> (i32, i32) {
    %c0_i32 = arith.constant 0 : i32
    %c0_i32_0 = arith.constant 0 : i32
    return %c0_i32, %arg0 : i32, i32
  }
  func.func @transform_1(%arg0: i32) -> (i32, i32) {
    %c0_i32 = arith.constant 0 : i32
    %c0_i32_0 = arith.constant 0 : i32
    %c0_i32_1 = arith.constant 0 : i32
    return %c0_i32, %c0_i32_0 : i32, i32
  }
  func.func @transform_2(%arg0: i32) -> (i32, i32) {
    %c0_i32 = arith.constant 0 : i32
    %c0_i32_0 = arith.constant 0 : i32
    %c0_i32_1 = arith.constant 0 : i32
    return %c0_i32, %c0_i32_0 : i32, i32
  }
  func.func @transform_3(%arg0: i32) -> (i32, i32) {
    %c0_i32 = arith.constant 0 : i32
    %c0_i32_0 = arith.constant 0 : i32
    %c0_i32_1 = arith.constant 0 : i32
    return %c0_i32, %c0_i32_0 : i32, i32
  }
  func.func @transform_4(%arg0: i32) -> (i32, i32) {
    %c0_i32 = arith.constant 0 : i32
    %c0_i32_0 = arith.constant 0 : i32
    %c0_i32_1 = arith.constant 0 : i32
    return %c0_i32, %c0_i32_0 : i32, i32
  }
  func.func @transform_5(%arg0: i32) -> (i32, i32) {
    %c0_i32 = arith.constant 0 : i32
    %c0_i32_0 = arith.constant 0 : i32
    %c0_i32_1 = arith.constant 0 : i32
    return %c0_i32, %c0_i32_0 : i32, i32
  }
  func.func @transform_6(%arg0: i32) -> (i32, i32) {
    %c0_i32 = arith.constant 0 : i32
    %c0_i32_0 = arith.constant 0 : i32
    %c0_i32_1 = arith.constant 0 : i32
    return %c0_i32, %c0_i32_0 : i32, i32
  }
  func.func @transform_7(%arg0: i32) -> (i32, i32) {
    %c0_i32 = arith.constant 0 : i32
    %c0_i32_0 = arith.constant 0 : i32
    return %c0_i32, %arg0 : i32, i32
  }
}

</mosaic_0001>

<bundles_post_ra>
// kernel: bugnet_forward.1
= control target key start
LH: loop header
LB: loop body
LE: loop exit
PB: predicated region body
PF: predicated region fallthrough
CT: control target
= control target key end

     0   :  { %vm140_vm0 = vcmask 130048   ;;  %v818_v3 = vmov 0   ;;  %vm820_vm1 = vmmov 0   ;;  %vm526_vm2 = vcmask 523264   ;;  %s1037_s0 = inlined_call_operand.vmem [shape: f32[16,128], index: 0, kind: input, shape index: {}]   ;;  %s1038_s1 = inlined_call_operand.vmem [shape: f32[128,16], index: 1, kind: input, shape index: {}]   ;;  %s1039_s2 = inlined_call_operand.vmem [shape: f32[128,1], index: 2, kind: input, shape index: {}]   ;;  %s1040_s4 = inlined_call_operand.vmem [shape: f32[64,1], index: 4, kind: input, shape index: {}]   ;;  %s1041_s6 = inlined_call_operand.vmem [shape: f32[8,1], index: 6, kind: input, shape index: {}]   ;;  %s1042_s3 = inlined_call_operand.vmem [shape: f32[64,128], index: 3, kind: input, shape index: {}]   ;;  %s1043_s5 = inlined_call_operand.vmem [shape: f32[8,64], index: 5, kind: input, shape index: {}]   ;;  %s1044_s7 = inlined_call_operand.vmem [shape: f32[8,128], index: 7, kind: output, shape index: {}]  }
   0x1   :  { %v26_v0 = vld [vmem:[%s1037_s0] sm:$0xff]  ;;  %v27_v1 = vld [vmem:[%s1037_s0 + $0x8] sm:$0xff]  ;;  %816 = vset.pattern.permute.xlu0 %v818_v3  ;;  %817 = vset.pattern.permute.xlu1 %v818_v3  ;;  %v30_v6 = vld [vmem:[%s1038_s1 + $0x10] sm:$0xff] }
   0x2   :  { %v28_v2 = vld [vmem:[%s1038_s1] sm:$0xff]  ;;  %v764_v4 = vpack.c.bf16 %v27_v1, %v26_v0  ;;  %v29_v5 = vld [vmem:[%s1038_s1 + $0x8] sm:$0xff]  ;;  %v46_v8 = vld [vmem:[%s1039_s2 + $0x10] sm:$0xff] }
   0x3   :  { %677 = vmatprep.mubr.msk.f32.mxu0 %vm140_vm0, %v28_v2  ;;  %v44_v7 = vld [vmem:[%s1039_s2] sm:$0xff]  ;;  %v31_v9 = vld [vmem:[%s1038_s1 + $0x18] sm:$0xff]  ;;  %v45_v10 = vld [vmem:[%s1039_s2 + $0x8] sm:$0xff]  ;;  %72 = vperm.xlu1 %817, %v46_v8  }
   0x4   :  { %765 = vmatprep.subr.bf16.mxu0 %v764_v4  ;;  %62 = vperm.xlu0 %816, %v44_v7   ;;  %v32_v11 = vld [vmem:[%s1038_s1 + $0x20] sm:$0xff]  ;;  %v47_v12 = vld [vmem:[%s1039_s2 + $0x18] sm:$0xff]  ;;  %v33_v13 = vld [vmem:[%s1038_s1 + $0x28] sm:$0xff] }
   0x5   :  { %767 = vmatpush3.bf16.msra.mxu0 %v764_v4  ;;  %v48_v14 = vld [vmem:[%s1039_s2 + $0x20] sm:$0xff]  ;;  %v34_v15 = vld [vmem:[%s1038_s1 + $0x30] sm:$0xff]  ;;  %v49_v16 = vld [vmem:[%s1039_s2 + $0x28] sm:$0xff] }
   0x6   :  { %v35_v17 = vld [vmem:[%s1038_s1 + $0x38] sm:$0xff]  ;;  %v50_v18 = vld [vmem:[%s1039_s2 + $0x30] sm:$0xff]  ;;  %v36_v19 = vld [vmem:[%s1038_s1 + $0x40] sm:$0xff] }
   0x7   :  { %77 = vperm.xlu1 %817, %v47_v12   ;;  %v51_v20 = vld [vmem:[%s1039_s2 + $0x38] sm:$0xff]  ;;  %v37_v21 = vld [vmem:[%s1038_s1 + $0x48] sm:$0xff]  ;;  %v52_v22 = vld [vmem:[%s1039_s2 + $0x40] sm:$0xff] }
   0x8   :  { %678 = vmatmul.mubr.msk.f32.vlgmr.msra.gmra.mrb[0].mxu0 %vm140_vm0, %v29_v5  ;;  %67 = vperm.xlu0 %816, %v45_v10   ;;  %v38_v23 = vld [vmem:[%s1038_s1 + $0x50] sm:$0xff]  ;;  %v53_v24 = vld [vmem:[%s1039_s2 + $0x48] sm:$0xff]  ;;  %v39_v25 = vld [vmem:[%s1038_s1 + $0x58] sm:$0xff] }
   0x9   :  { %680 = vmatprep.mubr.msk.f32.mxu0 %vm140_vm0, %v30_v6  ;;  %v54_v26 = vld [vmem:[%s1039_s2 + $0x50] sm:$0xff]  ;;  %v40_v27 = vld [vmem:[%s1038_s1 + $0x60] sm:$0xff]  ;;  %v55_v28 = vld [vmem:[%s1039_s2 + $0x58] sm:$0xff] }
   0xa   :  { %v41_v29 = vld [vmem:[%s1038_s1 + $0x68] sm:$0xff]  ;;  %v56_v30 = vld [vmem:[%s1039_s2 + $0x60] sm:$0xff]  ;;  %v42_v31 = vld [vmem:[%s1038_s1 + $0x70] sm:$0xff] }
   0xb   :  { %87 = vperm.xlu1 %817, %v49_v16   ;;  %v57_v32 = vld [vmem:[%s1039_s2 + $0x68] sm:$0xff]  ;;  %v43_v33 = vld [vmem:[%s1038_s1 + $0x78] sm:$0xff]  ;;  %v58_v34 = vld [vmem:[%s1039_s2 + $0x70] sm:$0xff] }
   0xc   :  { %681 = vmatmul.mubr.msk.f32.gmra.mrb[2].mxu0 %vm140_vm0, %v31_v9  ;;  %82 = vperm.xlu0 %816, %v48_v14   ;;  %v59_v35 = vld [vmem:[%s1039_s2 + $0x78] sm:$0xff]  ;;  %v358_v36 = vld [vmem:[%s1040_s4] sm:$0xff]  ;;  %v359_v37 = vld [vmem:[%s1040_s4 + $0x8] sm:$0xff] }
   0xd   :  { %683 = vmatprep.mubr.msk.f32.mxu0 %vm140_vm0, %v32_v11  ;;  %v360_v38 = vld [vmem:[%s1040_s4 + $0x10] sm:$0xff]  ;;  %v361_v39 = vld [vmem:[%s1040_s4 + $0x18] sm:$0xff]  ;;  %v362_v40 = vld [vmem:[%s1040_s4 + $0x20] sm:$0xff] }
   0xe   :  { %v363_v41 = vld [vmem:[%s1040_s4 + $0x28] sm:$0xff]  ;;  %v364_v42 = vld [vmem:[%s1040_s4 + $0x30] sm:$0xff]  ;;  %v365_v43 = vld [vmem:[%s1040_s4 + $0x38] sm:$0xff] }
   0xf   :  { %97 = vperm.xlu1 %817, %v51_v20   ;;  %v520_v44 = vld [vmem:[%s1041_s6] sm:$0xff] }
  0x10   :  { %684 = vmatmul.mubr.msk.f32.gmra.mrb[4].mxu0 %vm140_vm0, %v33_v13  ;;  %92 = vperm.xlu0 %816, %v50_v18   ;;  %v350_v45 = vld [vmem:[%s1042_s3] sm:$0xff] }
  0x11   :  { %686 = vmatprep.mubr.msk.f32.mxu0 %vm140_vm0, %v34_v15  ;;  %733 = vmatprep.mubr.f32.mxu1 %v350_v45 }
  0x13   :  { %107 = vperm.xlu1 %817, %v53_v24  }
  0x14   :  { %687 = vmatmul.mubr.msk.f32.gmra.mrb[6].mxu0 %vm140_vm0, %v35_v17  ;;  %102 = vperm.xlu0 %816, %v52_v22  }
  0x15   :  { %689 = vmatprep.mubr.msk.f32.mxu0 %vm140_vm0, %v36_v19 }
  0x17   :  { %117 = vperm.xlu1 %817, %v55_v28  }
  0x18   :  { %690 = vmatmul.mubr.msk.f32.gmra.mrb[8].mxu0 %vm140_vm0, %v37_v21  ;;  %112 = vperm.xlu0 %816, %v54_v26  }
  0x19   :  { %692 = vmatprep.mubr.msk.f32.mxu0 %vm140_vm0, %v38_v23 }
  0x1b   :  { %127 = vperm.xlu1 %817, %v57_v32  }
  0x1c   :  { %693 = vmatmul.mubr.msk.f32.gmra.mrb[10].mxu0 %vm140_vm0, %v39_v25  ;;  %122 = vperm.xlu0 %816, %v56_v30  }
  0x1d   :  { %695 = vmatprep.mubr.msk.f32.mxu0 %vm140_vm0, %v40_v27 }
  0x1f   :  { %137 = vperm.xlu1 %817, %v59_v35  }
  0x20   :  { %696 = vmatmul.mubr.msk.f32.gmra.mrb[12].mxu0 %vm140_vm0, %v41_v29  ;;  %132 = vperm.xlu0 %816, %v58_v34  }
  0x21   :  { %698 = vmatprep.mubr.msk.f32.mxu0 %vm140_vm0, %v42_v31 }
  0x23   :  { %373 = vperm.xlu1 %817, %v359_v37  }
  0x24   :  { %699 = vmatmul.mubr.msk.f32.gmra.mrb[14].mxu0 %vm140_vm0, %v43_v33  ;;  %368 = vperm.xlu0 %816, %v358_v36  }
  0x27   :  { %383 = vperm.xlu1 %817, %v361_v39  }
  0x28   :  { %378 = vperm.xlu0 %816, %v360_v38  }
  0x2b   :  { %393 = vperm.xlu1 %817, %v363_v41  }
  0x2c   :  { %388 = vperm.xlu0 %816, %v362_v40  }
  0x2f   :  { %403 = vperm.xlu1 %817, %v365_v43  }
  0x30   :  { %398 = vperm.xlu0 %816, %v364_v42  }
  0x34   :  { %523 = vperm.xlu0 %816, %v520_v44  }
  0x82   :  { %v73_v46 = vpop.permute.xlu1 %72 }
  0x83   :  { %v63_v47 = vpop.permute.xlu0 %62 }
  0x86   :  { %v78_v48 = vpop.permute.xlu1 %77 }
  0x87   :  { %v68_v49 = vpop.permute.xlu0 %67 }
  0x8a   :  { %v88_v50 = vpop.permute.xlu1 %87 }
  0x8b   :  { %v83_v51 = vpop.permute.xlu0 %82 }
  0x8e   :  { %v98_v57 = vpop.permute.xlu1 %97 }
  0x8f   :  { %v93_v60 = vpop.permute.xlu0 %92 }
  0x92   :  { %v108_v6 = vpop.permute.xlu1 %107 }
  0x93   :  { %v103_v9 = vpop.permute.xlu0 %102 }
  0x96   :  { %v118_v18 = vpop.permute.xlu1 %117 }
  0x97   :  { %v113_v21 = vpop.permute.xlu0 %112 }
  0x9a   :  { %v128_v31 = vpop.permute.xlu1 %127 }
  0x9b   :  { %v123_v34 = vpop.permute.xlu0 %122 }
  0x9e   :  { %v138_v43 = vpop.permute.xlu1 %137 }
  0xdb   :  { %v679_v52 = vpop.f32.mrb[0].mxu0 }
  0xdc   :  { %v261_v53 = vadd.f32 %v679_v52, %v68_v49  ;;  %v255_v54 = vpop.f32.mrb[1].mxu0 }
  0xdd   :  { %v256_v55 = vadd.f32 %v255_v54, %v63_v47  ;;  %v351_v54 = vld [vmem:[%s1042_s3 + $0x8] sm:$0xff] }
  0xde   :  { %v335_v56 = vmax.f32 %v261_v53, 0.0 }
  0xdf   :  { %v334_v58 = vmax.f32 %v256_v55, 0.0  ;;  %v682_v59 = vpop.f32.mrb[2].mxu0  ;;  %v352_v55 = vld [vmem:[%s1042_s3 + $0x10] sm:$0xff] }
  0xe0   :  { %v271_v61 = vadd.f32 %v682_v59, %v78_v48  ;;  %v265_v62 = vpop.f32.mrb[3].mxu0  ;;  %v356_v59 = vld [vmem:[%s1042_s3 + $0x30] sm:$0xff] }
  0xe1   :  { %v266_v63 = vadd.f32 %v265_v62, %v73_v46  ;;  %v768_v0 = vpack.c.bf16 %v335_v56, %v334_v58  ;;  %v133_v46 = vpop.permute.xlu0 %132  ;;  %v353_v56 = vld [vmem:[%s1042_s3 + $0x18] sm:$0xff]  ;;  %v355_v58 = vld [vmem:[%s1042_s3 + $0x28] sm:$0xff]  ;;  %v821_v62 = vmov 0.0  }
  0xe2   :  { %v337_v1 = vmax.f32 %v271_v61, 0.0  ;;  %v819_v61 = vmov 0.0|0.0   ;;  %761 = vmatprep.mubr.msk.f32.mxu0 %vm820_vm1, %v821_v62 }
  0xe3   :  { %v336_v2 = vmax.f32 %v266_v63, 0.0  ;;  %v685_v3 = vpop.f32.mrb[4].mxu0  ;;  %769 = vmatprep.subr.bf16.mxu1 %v768_v0  ;;  %800 = vmatprep.subr.bf16.mxu0 %v819_v61  ;;  %v374_v63 = vpop.permute.xlu1 %373 }
  0xe4   :  { %v281_v4 = vadd.f32 %v685_v3, %v88_v50  ;;  %v275_v5 = vpop.f32.mrb[5].mxu0  ;;  %771 = vmatpush3.bf16.msra.mxu1 %v768_v0 }
  0xe5   :  { %v772_v7 = vpack.c.bf16 %v337_v1, %v336_v2  ;;  %v276_v8 = vadd.f32 %v275_v5, %v83_v51  ;;  %v369_v0 = vpop.permute.xlu0 %368 }
  0xe6   :  { %v339_v10 = vmax.f32 %v281_v4, 0.0 }
  0xe7   :  { %v338_v11 = vmax.f32 %v276_v8, 0.0  ;;  %v688_v12 = vpop.f32.mrb[6].mxu0  ;;  %773 = vmatprep.subr.bf16.mxu1 %v772_v7  ;;  %v384_v1 = vpop.permute.xlu1 %383 }
  0xe8   :  { %v291_v13 = vadd.f32 %v688_v12, %v98_v57  ;;  %v285_v14 = vpop.f32.mrb[7].mxu0  ;;  %775 = vmatpush3.bf16.msra.mxu1 %v772_v7  ;;  %v354_v57 = vld [vmem:[%s1042_s3 + $0x20] sm:$0xff] }
  0xe9   :  { %v776_v15 = vpack.c.bf16 %v339_v10, %v338_v11  ;;  %v286_v16 = vadd.f32 %v285_v14, %v93_v60  ;;  %v357_v60 = vld [vmem:[%s1042_s3 + $0x38] sm:$0xff]  ;;  %v379_v3 = vpop.permute.xlu0 %378 }
  0xea   :  { %v341_v17 = vmax.f32 %v291_v13, 0.0 }
  0xeb   :  { %v340_v19 = vmax.f32 %v286_v16, 0.0  ;;  %v691_v20 = vpop.f32.mrb[8].mxu0  ;;  %777 = vmatprep.subr.bf16.mxu1 %v776_v15  ;;  %v394_v12 = vpop.permute.xlu1 %393 }
  0xec   :  { %v301_v22 = vadd.f32 %v691_v20, %v108_v6  ;;  %v295_v23 = vpop.f32.mrb[9].mxu0  ;;  %779 = vmatpush3.bf16.msra.mxu1 %v776_v15 }
  0xed   :  { %v780_v24 = vpack.c.bf16 %v341_v17, %v340_v19  ;;  %v296_v25 = vadd.f32 %v295_v23, %v103_v9  ;;  %v389_v15 = vpop.permute.xlu0 %388 }
  0xee   :  { %v343_v26 = vmax.f32 %v301_v22, 0.0 }
  0xef   :  { %v342_v27 = vmax.f32 %v296_v25, 0.0  ;;  %v694_v28 = vpop.f32.mrb[10].mxu0  ;;  %781 = vmatprep.subr.bf16.mxu1 %v780_v24 }
  0xf0   :  { %v311_v29 = vadd.f32 %v694_v28, %v118_v18  ;;  %v305_v30 = vpop.f32.mrb[11].mxu0  ;;  %783 = vmatpush3.bf16.msra.mxu1 %v780_v24  ;;  %v404_v24 = vpop.permute.xlu1 %403 }
  0xf1   :  { %v784_v32 = vpack.c.bf16 %v343_v26, %v342_v27  ;;  %v306_v33 = vadd.f32 %v305_v30, %v113_v21  ;;  %v399_v27 = vpop.permute.xlu0 %398 }
  0xf2   :  { %v345_v35 = vmax.f32 %v311_v29, 0.0 }
  0xf3   :  { %v344_v36 = vmax.f32 %v306_v33, 0.0  ;;  %v697_v37 = vpop.f32.mrb[12].mxu0  ;;  %785 = vmatprep.subr.bf16.mxu1 %v784_v32 }
  0xf4   :  { %v321_v38 = vadd.f32 %v697_v37, %v128_v31  ;;  %v315_v39 = vpop.f32.mrb[13].mxu0  ;;  %787 = vmatpush3.bf16.msra.mxu1 %v784_v32 }
  0xf5   :  { %v788_v40 = vpack.c.bf16 %v345_v35, %v344_v36  ;;  %v316_v41 = vadd.f32 %v315_v39, %v123_v34  ;;  %v519_v35 = vld [vmem:[%s1043_s5] sm:$0xff]  ;;  %v524_v36 = vpop.permute.xlu0 %523 }
  0xf6   :  { %v347_v42 = vmax.f32 %v321_v38, 0.0 }
  0xf7   :  { %v346_v44 = vmax.f32 %v316_v41, 0.0  ;;  %v700_v45 = vpop.f32.mrb[14].mxu0  ;;  %789 = vmatprep.subr.bf16.mxu1 %v788_v40 }
  0xf8   :  { %v331_v47 = vadd.f32 %v700_v45, %v138_v43  ;;  %v325_v48 = vpop.f32.mrb[15].mxu0  ;;  %791 = vmatpush3.bf16.msra.mxu1 %v788_v40 }
  0xf9   :  { %v792_v49 = vpack.c.bf16 %v347_v42, %v346_v44  ;;  %v326_v50 = vadd.f32 %v325_v48, %v133_v46 }
  0xfa   :  { %v349_v51 = vmax.f32 %v331_v47, 0.0 }
  0xfb   :  { %v348_v52 = vmax.f32 %v326_v50, 0.0  ;;  %793 = vmatprep.subr.bf16.mxu1 %v792_v49 }
  0xfc   :  { %795 = vmatpush3.bf16.msra.mxu1 %v792_v49 }
  0xfd   :  { %v796_v53 = vpack.c.bf16 %v349_v51, %v348_v52 }
  0xff   :  { %797 = vmatprep.subr.bf16.mxu1 %v796_v53 }
 0x100   :  { %799 = vmatpush3.bf16.msra.mxu1 %v796_v53 }
 0x103   :  { %734 = vmatmul.mubr.f32.vlgmr.msra.gmra.mrb[0].mxu1 %v351_v54 }
 0x104   :  { %736 = vmatprep.mubr.f32.mxu1 %v352_v55 }
 0x107   :  { %737 = vmatmul.mubr.f32.gmra.mrb[2].mxu1 %v353_v56 }
 0x108   :  { %739 = vmatprep.mubr.f32.mxu1 %v354_v57 }
 0x10b   :  { %740 = vmatmul.mubr.f32.gmra.mrb[4].mxu1 %v355_v58 }
 0x10c   :  { %742 = vmatprep.mubr.f32.mxu1 %v356_v59 }
 0x10f   :  { %743 = vmatmul.mubr.f32.gmra.mrb[6].mxu1 %v357_v60 }
 0x1d6   :  { %v735_v2 = vpop.f32.mrb[0].mxu1 }
 0x1d7   :  { %v478_v4 = vadd.f32 %v735_v2, %v374_v63  ;;  %v472_v5 = vpop.f32.mrb[1].mxu1 }
 0x1d8   :  { %v473_v6 = vadd.f32 %v472_v5, %v369_v0 }
 0x1d9   :  { %v512_v7 = vmax.f32 %v478_v4, 0.0 }
 0x1da   :  { %v511_v8 = vmax.f32 %v473_v6, 0.0  ;;  %v738_v9 = vpop.f32.mrb[2].mxu1 }
 0x1db   :  { %v488_v10 = vadd.f32 %v738_v9, %v384_v1  ;;  %v482_v11 = vpop.f32.mrb[3].mxu1 }
 0x1dc   :  { %v801_v13 = vpack.c.bf16 %v512_v7, %v511_v8  ;;  %v483_v14 = vadd.f32 %v482_v11, %v379_v3 }
 0x1dd   :  { %v514_v16 = vmax.f32 %v488_v10, 0.0 }
 0x1de   :  { %v513_v17 = vmax.f32 %v483_v14, 0.0  ;;  %v741_v18 = vpop.f32.mrb[4].mxu1  ;;  %802 = vmatpush3.bf16.msra.mxu0 %v801_v13 }
 0x1df   :  { %v498_v19 = vadd.f32 %v741_v18, %v394_v12  ;;  %v492_v20 = vpop.f32.mrb[5].mxu1  ;;  %803 = vmatprep.subr.bf16.mxu0 %v819_v61 }
 0x1e0   :  { %v804_v21 = vpack.c.bf16 %v514_v16, %v513_v17  ;;  %v493_v22 = vadd.f32 %v492_v20, %v389_v15 }
 0x1e1   :  { %v516_v23 = vmax.f32 %v498_v19, 0.0 }
 0x1e2   :  { %v515_v25 = vmax.f32 %v493_v22, 0.0  ;;  %v744_v26 = vpop.f32.mrb[6].mxu1  ;;  %805 = vmatpush3.bf16.msra.mxu0 %v804_v21 }
 0x1e3   :  { %v508_v28 = vadd.f32 %v744_v26, %v404_v24  ;;  %v502_v29 = vpop.f32.mrb[7].mxu1  ;;  %806 = vmatprep.subr.bf16.mxu0 %v819_v61 }
 0x1e4   :  { %v807_v30 = vpack.c.bf16 %v516_v23, %v515_v25  ;;  %v503_v31 = vadd.f32 %v502_v29, %v399_v27 }
 0x1e5   :  { %v518_v32 = vmax.f32 %v508_v28, 0.0 }
 0x1e6   :  { %v517_v33 = vmax.f32 %v503_v31, 0.0  ;;  %808 = vmatpush3.bf16.msra.mxu0 %v807_v30 }
 0x1e7   :  { %809 = vmatprep.subr.bf16.mxu0 %v819_v61 }
 0x1e8   :  { %v810_v34 = vpack.c.bf16 %v518_v32, %v517_v33 }
 0x1ea   :  { %811 = vmatpush3.bf16.msra.mxu0 %v810_v34 }
 0x1ed   :  { %762 = vmatmul.mubr.msk.f32.vlgmr.msra.gmra.mrb[16].mxu0 %vm526_vm2, %v519_v35 }
 0x2c0   :  { %v596_v37 = vpop.f32.mrb[16].mxu0 }
 0x2c1   :  { %v597_v38 = vadd.f32 %v596_v37, %v524_v36  ;;  %v763_v39 = vpop.f32.mrb[17].mxu0 }
 0x2c3   :  { %600 = vst [vmem:[%s1044_s7] sm:$0xff] %v597_v38 }

</bundles_post_ra>
